<compile_context>
chip_gen: v5e
topology: v5e:2x2
jax: 0.10.0
libtpu: 0.0.40
codegen_flags: <defaults>
</compile_context>

<pallas_src>
import jax
import jax.numpy as jnp
from jax import lax
from jax.experimental import pallas as pl
from jax.experimental.pallas import tpu as pltpu


def _round_up(x, m):
    return ((x + m - 1) // m) * m


def _pick_vocab_tile(vocab_size, ep, itemsize, *, max_tile=4096,
                     vmem_budget_bytes=8 << 20):
    """Largest multiple-of-128 vocab tile whose double-buffered weight slab
    (2 * tile * ep * itemsize bytes) fits the per-generation VMEM budget."""
    v128 = max(_round_up(vocab_size, 128), 128)
    t_budget = max((vmem_budget_bytes // (2 * ep * itemsize)) // 128 * 128, 128)
    return max(128, min(max_tile, v128, t_budget))


# --------------------------------------------------------------------------
# Kernels
# --------------------------------------------------------------------------

def _emb_kernel(x_ref, w1_ref, emb_ref):
    """emb += x_tile @ w1_tile, streamed over the vocab (reduction) axis.

    x_ref:   (bp, tk)   input columns for this vocab tile
    w1_ref:  (tk, te)   contiguous slab of w1 in (V, E) layout
    emb_ref: (bp, te)   f32 output block, used directly as the accumulator
    """
    @pl.when(pl.program_id(1) == 0)
    def _():
        emb_ref[...] = jnp.zeros_like(emb_ref)

    emb_ref[...] += jnp.dot(
        x_ref[...], w1_ref[...], preferred_element_type=jnp.float32
    )


def _out_kernel(emb_ref, w2_ref, out_ref):
    """out_tile = emb @ w2_tile.T, streamed over the output-vocab axis.

    emb_ref: (bp, ep)   small, stays resident in VMEM
    w2_ref:  (tn, ep)   contiguous slab of w2 in its native (V, E) layout
    out_ref: (bp, tn)   lane-dense output tile
    """
    emb = emb_ref[...].astype(w2_ref.dtype)   # tiny VPU cast (bp x ep)
    out_ref[...] = lax.dot_general(
        emb, w2_ref[...],
        dimension_numbers=(((1,), (1,)), ((), ())),   # contract last dims
        preferred_element_type=jnp.float32,
    ).astype(out_ref.dtype)


# --------------------------------------------------------------------------
# Parameter preparation (runs ONCE, outside the forward hot path)
# --------------------------------------------------------------------------

def word2vec_prepare_params(w1, w2, *, weight_dtype=jnp.bfloat16,
                            max_vocab_tile=4096, num_emb_slices=None):
    """Cast / pad / re-layout the Linear weights once.

    w1: (E, V) = nn.Linear(vocab_size, embedding_size).weight
    w2: (V, E) = nn.Linear(embedding_size, vocab_size).weight
    """
    E, V = w1.shape
    assert w2.shape == (V, E), (w2.shape, (V, E))

    ep = max(_round_up(E, 128), 128)
    itemsize = jnp.dtype(weight_dtype).itemsize
    t = _pick_vocab_tile(V, ep, itemsize, max_tile=max_vocab_tile)
    vp = _round_up(V, t)

    if num_emb_slices is None:
        # Two embedding slices -> both v7x TensorCores stream disjoint halves
        # of w1.  Requires each slice to stay a multiple of 128 lanes.
        num_emb_slices = 2 if (ep % 256 == 0) else 1
    assert ep % (128 * num_emb_slices) == 0

    # w1 (E, V) -> contiguous (V, E) layout; both weights padded with zeros.
    w1_ve = jnp.pad(w1.T.astype(weight_dtype), ((0, vp - V), (0, ep - E)))
    w2_p = jnp.pad(w2.astype(weight_dtype), ((0, vp - V), (0, ep - E)))

    return dict(
        w1_ve=w1_ve, w2=w2_p,
        vocab_size=V, embedding_size=E,
        vocab_tile=t, num_emb_slices=num_emb_slices,
    )


# --------------------------------------------------------------------------
# Forward passes
# --------------------------------------------------------------------------

def _output_gemm(emb_pad, w2_p, vocab_tile):
    """(bp, ep) f32 embedding  x  (Vp, ep) w2  ->  (bp, Vp) f32 logits."""
    bp, ep = emb_pad.shape
    vp = w2_p.shape[0]
    return pl.pallas_call(
        _out_kernel,
        out_shape=jax.ShapeDtypeStruct((bp, vp), jnp.float32),
        grid=(vp // vocab_tile,),
        in_specs=[
            pl.BlockSpec((bp, ep), lambda j: (0, 0)),           # emb resident
            pl.BlockSpec((vocab_tile, ep), lambda j: (j, 0)),   # w2 streamed
        ],
        out_specs=pl.BlockSpec((bp, vocab_tile), lambda j: (0, j)),
        compiler_params=pltpu.CompilerParams(
            dimension_semantics=("parallel",),                  # megacore
        ),
    )(emb_pad, w2_p)


def word2vec_forward(x, params):
    """out = (x @ w1.T) @ w2.T for dense x of shape (B, V).  Returns f32 (B, V)."""
    w1_ve, w2_p = params["w1_ve"], params["w2"]
    V = params["vocab_size"]
    vp, ep = w1_ve.shape
    t = params["vocab_tile"]
    n_e = params["num_emb_slices"]
    te = ep // n_e

    B = x.shape[0]
    assert x.shape == (B, V), (x.shape, (B, V))

    # Only the (small, per-call) input is padded/cast here; weights were
    # prepared once in word2vec_prepare_params.
    bp = max(_round_up(B, 16), 16)
    x_p = jnp.pad(x.astype(w1_ve.dtype), ((0, bp - B), (0, vp - V)))

    # ---- Kernel 1: embedding = x @ w1.T, streaming contiguous w1 slabs ----
    emb = pl.pallas_call(
        _emb_kernel,
        out_shape=jax.ShapeDtypeStruct((bp, ep), jnp.float32),
        grid=(n_e, vp // t),
        in_specs=[
            pl.BlockSpec((bp, t), lambda e, k: (0, k)),
            pl.BlockSpec((t, te), lambda e, k: (k, e)),
        ],
        out_specs=pl.BlockSpec((bp, te), lambda e, k: (0, e)),
        compiler_params=pltpu.CompilerParams(
            dimension_semantics=("parallel", "arbitrary"),
        ),
    )(x_p, w1_ve)

    # ---- Kernel 2: output = embedding @ w2.T, streaming contiguous w2 slabs ----
    out_p = _output_gemm(emb, w2_p, t)
    return out_p[:B, :V]


def word2vec_forward_from_indices(idx, params):
    """Skip-gram fast path: x is one_hot(idx), so the first GEMM is a row
    gather of w1^T -- the whole (E, V) w1 stream is skipped and only the w2
    GEMM runs as a Pallas kernel.  Returns f32 (B, V)."""
    w1_ve, w2_p = params["w1_ve"], params["w2"]
    V = params["vocab_size"]
    t = params["vocab_tile"]

    B = idx.shape[0]
    bp = max(_round_up(B, 16), 16)

    emb = jnp.take(w1_ve, idx, axis=0).astype(jnp.float32)   # (B, ep), tiny
    emb = jnp.pad(emb, ((0, bp - B), (0, 0)))

    out_p = _output_gemm(emb, w2_p, t)
    return out_p[:B, :V]


# --------------------------------------------------------------------------
# Self-test
# --------------------------------------------------------------------------

if __name__ == "__main__":
    key = jax.random.PRNGKey(0)
    k_x, k_w1, k_w2, k_x2, k_w12, k_w22 = jax.random.split(key, 6)

    # ---- Test 1: module-sized shapes, one-hot input (as in the script) ----
    batch, vocab_size, embedding_size = 8, 128, 32

    idx = jax.random.randint(k_x, (batch,), 0, vocab_size)
    x = jax.nn.one_hot(idx, vocab_size, dtype=jnp.float32)
    w1 = jax.random.normal(k_w1, (embedding_size, vocab_size), jnp.float32) * 0.05
    w2 = jax.random.normal(k_w2, (vocab_size, embedding_size), jnp.float32) * 0.05

    ref = (x @ w1.T) @ w2.T

    # Exact f32 weight path.
    params_f32 = word2vec_prepare_params(w1, w2, weight_dtype=jnp.float32)
    out_f32 = jax.block_until_ready(word2vec_forward(x, params_f32))
    assert out_f32.shape == (batch, vocab_size)
    assert jnp.allclose(out_f32, ref, atol=1e-5, rtol=1e-5)

    # Default bf16-weight path (f32 accumulation): loose tolerance for bf16
    # weight rounding.
    params_bf16 = word2vec_prepare_params(w1, w2)
    out_bf16 = jax.block_until_ready(word2vec_forward(x, params_bf16))
    assert out_bf16.shape == (batch, vocab_size)
    assert jnp.allclose(out_bf16, ref, atol=5e-3, rtol=5e-2)

    # One-hot (index) fast path: skips the w1 stream entirely.
    out_idx = jax.block_until_ready(word2vec_forward_from_indices(idx, params_bf16))
    assert out_idx.shape == (batch, vocab_size)
    assert jnp.allclose(out_idx, ref, atol=5e-3, rtol=5e-2)

    # ---- Test 2: dense (non-one-hot) input exercising multiple vocab tiles
    # and the 2-slice embedding split (the v7x 'parallel' axis of kernel 1). ----
    B2, V2, E2 = 8, 384, 256
    x2 = jax.random.normal(k_x2, (B2, V2), jnp.float32)
    w1_2 = jax.random.normal(k_w12, (E2, V2), jnp.float32) * 0.05
    w2_2 = jax.random.normal(k_w22, (V2, E2), jnp.float32) * 0.05
    ref2 = jnp.dot(jnp.dot(x2, w1_2.T, precision="highest"), w2_2.T,
                   precision="highest")

    params2 = word2vec_prepare_params(
        w1_2, w2_2, weight_dtype=jnp.float32, max_vocab_tile=128
    )
    assert params2["num_emb_slices"] == 2 and params2["vocab_tile"] == 128
    out2 = jax.block_until_ready(word2vec_forward(x2, params2))
    assert out2.shape == (B2, V2)
    assert jnp.allclose(out2, ref2, atol=1e-2, rtol=1e-2)

    print("KERNEL_OK")
</pallas_src>

<mosaic_0001>
module attributes {stable_mosaic.version = 11 : i64} {
  func.func @_emb_kernel(%arg0: i32, %arg1: i32, %arg2: memref<16x128xf32, #tpu.memory_space<vmem>>, %arg3: memref<128x128xf32, #tpu.memory_space<vmem>>, %arg4: memref<16x128xf32, #tpu.memory_space<vmem>>) attributes {dimension_semantics = [#tpu.dimension_semantics<parallel>, #tpu.dimension_semantics<arbitrary>], iteration_bounds = array<i64: 1, 1>, scalar_prefetch = 0 : i64, scratch_operands = 0 : i64, tpu.core_type = #tpu.core_type<tc>, window_params = [{transform_indices = @transform_0, window_bounds = array<i64: 16, 128>}, {transform_indices = @transform_1, window_bounds = array<i64: 128, 128>}, {transform_indices = @transform_2, window_bounds = array<i64: 16, 128>}]} {
    %c0_i32 = arith.constant 0 : i32
    %0 = arith.cmpi eq, %arg1, %c0_i32 : i32
    %1 = arith.extui %0 : i1 to i32
    %c0_i32_0 = arith.constant 0 : i32
    %2 = arith.cmpi ne, %1, %c0_i32_0 : i32
    scf.if %2 {
      %cst_8 = arith.constant 0.000000e+00 : f32
      %9 = vector.broadcast %cst_8 : f32 to vector<16x128xf32>
      %c0_9 = arith.constant 0 : index
      %c0_10 = arith.constant 0 : index
      %10 = vector.load %arg4[%c0_9, %c0_10] : memref<16x128xf32, #tpu.memory_space<vmem>>, vector<16x128xf32>
      tpu.vector_store %arg4[%c0_9, %c0_10], %9 {strides = array<i32>} : memref<16x128xf32, #tpu.memory_space<vmem>>, vector<16x128xf32>,
    } else {
    }
    %c0 = arith.constant 0 : index
    %c0_1 = arith.constant 0 : index
    %3 = vector.load %arg4[%c0, %c0_1] : memref<16x128xf32, #tpu.memory_space<vmem>>, vector<16x128xf32>
    %c0_2 = arith.constant 0 : index
    %c0_3 = arith.constant 0 : index
    %4 = vector.load %arg2[%c0_2, %c0_3] : memref<16x128xf32, #tpu.memory_space<vmem>>, vector<16x128xf32>
    %c0_4 = arith.constant 0 : index
    %c0_5 = arith.constant 0 : index
    %5 = vector.load %arg3[%c0_4, %c0_5] : memref<128x128xf32, #tpu.memory_space<vmem>>, vector<128x128xf32>
    %cst = arith.constant dense<0.000000e+00> : vector<16x128xf32>
    %6 = tpu.matmul %4, %5, %cst {dimension_numbers = #tpu.dot_dimension_numbers<[1], [0], [0], [1], [0, 0, 1, 1], [], []>} : vector<16x128xf32>, vector<128x128xf32>, vector<16x128xf32> -> vector<16x128xf32>
    %7 = arith.addf %3, %6 : vector<16x128xf32>
    %c0_6 = arith.constant 0 : index
    %c0_7 = arith.constant 0 : index
    %8 = vector.load %arg4[%c0_6, %c0_7] : memref<16x128xf32, #tpu.memory_space<vmem>>, vector<16x128xf32>
    tpu.vector_store %arg4[%c0_6, %c0_7], %7 {strides = array<i32>} : memref<16x128xf32, #tpu.memory_space<vmem>>, vector<16x128xf32>,
    return
  }
  func.func @transform_0(%arg0: i32, %arg1: i32) -> (i32, i32) {
    %c0_i32 = arith.constant 0 : i32
    %c0_i32_0 = arith.constant 0 : i32
    return %c0_i32, %arg1 : i32, i32
  }
  func.func @transform_1(%arg0: i32, %arg1: i32) -> (i32, i32) {
    %c0_i32 = arith.constant 0 : i32
    return %arg1, %arg0 : i32, i32
  }
  func.func @transform_2(%arg0: i32, %arg1: i32) -> (i32, i32) {
    %c0_i32 = arith.constant 0 : i32
    %c0_i32_0 = arith.constant 0 : i32
    return %c0_i32, %arg0 : i32, i32
  }
}

</mosaic_0001>

<bundles_post_ra>
// kernel: tpu_custom_call.1
= control target key start
LH: loop header
LB: loop body
LE: loop exit
PB: predicated region body
PF: predicated region fallthrough
CT: control target
= control target key end

     0   :  { %7 = vsyncpa [#allocation3], 0  ;;  %s255_s0 = inlined_call_operand.hbm [shape: f32[16,128], index: 0, kind: input, shape index: {}]   ;;  %s256_s1 = inlined_call_operand.hbm [shape: f32[128,128], index: 1, kind: input, shape index: {}]   ;;  %s257_s2 = inlined_call_operand.hbm [shape: f32[16,128], index: 2, kind: output, shape index: {}]  }
   0x1   :  { %8 = vsyncpa [#allocation6], 0 }
   0x2   :  { %9 = vsyncpa [#allocation4], 0  ;;  %s14_s11 = sshll.u32 %s255_s0, 4  ;;  %s217_s12 = smov [#allocation2]   ;;  %s15_s11 = int_to_ptr.hbm [resolvable:$true] %s14_s11 }
   0x3   :  { %s16_s13 = sshll.u32 %s217_s12, 4  ;;  %s27_s16 = sshll.u32 %s256_s1, 4  ;;  %s17_s13 = int_to_ptr.vmem [resolvable:$true] %s16_s13  ;;  %s28_s16 = int_to_ptr.hbm [resolvable:$true] %s27_s16 }
   0x4   :  { %s218_s17 = smov 128   ;;  %s219_s18 = smov 8  }
   0x5   :  { %22 = dma.hbm_to_vmem [thread:$0]  %s15_s11, 256, %s17_s13, [#allocation3], %s218_s17, %s218_s17, %s219_s18  }
   0x6   :  { %s220_s19 = smov [#allocation5]  }
   0x7   :  { %s29_s20 = sshll.u32 %s220_s19, 4  ;;  %s30_s20 = int_to_ptr.vmem [resolvable:$true] %s29_s20 }
   0x8   :  { %35 = dma.hbm_to_vmem [thread:$0]  %s28_s16, 2048, %s30_s20, [#allocation6], %s218_s17, %s218_s17, %s219_s18  }
   0x9   :  { %211 = dma.done.wait [#allocation3], 256  }
   0xa   :  { %212 = vsyncadd [#allocation3], 4294967040 }
   0xb   :  { %213 = dma.done.wait [#allocation6], 2048  }
   0xc   :  { %214 = vsyncadd [#allocation6], 4294965248  ;;  %v69_v0 = vld [vmem:[#allocation5 + $0x78] sm:$0xff]  ;;  %v68_v1 = vld [vmem:[#allocation5 + $0x70] sm:$0xff]  ;;  %s221_s0 = smov [#allocation7]   ;;  %s103_s23 = sshll.u32 %s257_s2, 4  ;;  %s104_s23 = int_to_ptr.hbm [resolvable:$true] %s103_s23 }
   0xd   :  { %70 = vmatpush.msra.mxu0 %v69_v0  ;;  %117 = vmatpush.msra.mxu1 %v69_v0  ;;  %v67_v2 = vld [vmem:[#allocation5 + $0x68] sm:$0xff]  ;;  %v66_v3 = vld [vmem:[#allocation5 + $0x60] sm:$0xff]  ;;  %v65_v4 = vld [vmem:[#allocation5 + $0x58] sm:$0xff]  ;;  %s101_s1 = sshll.u32 %s221_s0, 4  ;;  %s102_s1 = int_to_ptr.vmem [resolvable:$true] %s101_s1 }
   0xe   :  { %v64_v5 = vld [vmem:[#allocation5 + $0x50] sm:$0xff]  ;;  %v63_v6 = vld [vmem:[#allocation5 + $0x48] sm:$0xff]  ;;  %v62_v7 = vld [vmem:[#allocation5 + $0x40] sm:$0xff] }
   0xf   :  { %71 = vmatpush.msra.mxu0 %v68_v1  ;;  %118 = vmatpush.msra.mxu1 %v68_v1  ;;  %v61_v8 = vld [vmem:[#allocation5 + $0x38] sm:$0xff]  ;;  %v60_v9 = vld [vmem:[#allocation5 + $0x30] sm:$0xff]  ;;  %v59_v10 = vld [vmem:[#allocation5 + $0x28] sm:$0xff] }
  0x10   :  { %v58_v11 = vld [vmem:[#allocation5 + $0x20] sm:$0xff]  ;;  %v57_v12 = vld [vmem:[#allocation5 + $0x18] sm:$0xff]  ;;  %v56_v13 = vld [vmem:[#allocation5 + $0x10] sm:$0xff] }
  0x11   :  { %72 = vmatpush.msra.mxu0 %v67_v2  ;;  %119 = vmatpush.msra.mxu1 %v67_v2  ;;  %v55_v14 = vld [vmem:[#allocation5 + $0x8] sm:$0xff]  ;;  %v54_v15 = vld [vmem:[#allocation5] sm:$0xff]  ;;  %v52_v16 = vld [vmem:[#allocation2] sm:$0xff] }
  0x12   :  { %v53_v17 = vld [vmem:[#allocation2 + $0x8] sm:$0xff] }
  0x13   :  { %73 = vmatpush.msra.mxu0 %v66_v3  ;;  %120 = vmatpush.msra.mxu1 %v66_v3 }
  0x15   :  { %74 = vmatpush.msra.mxu0 %v65_v4  ;;  %121 = vmatpush.msra.mxu1 %v65_v4 }
  0x17   :  { %75 = vmatpush.msra.mxu0 %v64_v5  ;;  %122 = vmatpush.msra.mxu1 %v64_v5 }
  0x19   :  { %76 = vmatpush.msra.mxu0 %v63_v6  ;;  %123 = vmatpush.msra.mxu1 %v63_v6 }
  0x1b   :  { %77 = vmatpush.msra.mxu0 %v62_v7  ;;  %124 = vmatpush.msra.mxu1 %v62_v7 }
  0x1d   :  { %78 = vmatpush.msra.mxu0 %v61_v8  ;;  %125 = vmatpush.msra.mxu1 %v61_v8 }
  0x1f   :  { %79 = vmatpush.msra.mxu0 %v60_v9  ;;  %126 = vmatpush.msra.mxu1 %v60_v9 }
  0x21   :  { %80 = vmatpush.msra.mxu0 %v59_v10  ;;  %127 = vmatpush.msra.mxu1 %v59_v10 }
  0x23   :  { %81 = vmatpush.msra.mxu0 %v58_v11  ;;  %128 = vmatpush.msra.mxu1 %v58_v11 }
  0x25   :  { %82 = vmatpush.msra.mxu0 %v57_v12  ;;  %129 = vmatpush.msra.mxu1 %v57_v12 }
  0x27   :  { %83 = vmatpush.msra.mxu0 %v56_v13  ;;  %130 = vmatpush.msra.mxu1 %v56_v13 }
  0x29   :  { %84 = vmatpush.msra.mxu0 %v55_v14  ;;  %131 = vmatpush.msra.mxu1 %v55_v14 }
  0x2b   :  { %85 = vmatpush.msra.mxu0 %v54_v15  ;;  %132 = vmatpush.msra.mxu1 %v54_v15 }
  0x2c   :  { %86 = vmatmul.f32.vlgmr.msra.gmra.mxu0 %v52_v16  ;;  %89 = vmatmul.f32.vlgmr.msra.gmra.mxu1 %v53_v17 }
  0xa9   :  { %v87_v18 = vpop.f32.mrf.mxu0  ;;  %v90_v19 = vpop.f32.mrf.mxu1 }
  0xaa   :  { %95 = vst [vmem:[#allocation7] sm:$0xff] %v87_v18 }
  0xab   :  { %96 = vst [vmem:[#allocation7 + $0x8] sm:$0xff] %v90_v19 }
  0xac   :  { %109 = dma.vmem_to_hbm [thread:$0]  %s102_s1, 256, %s104_s23, [#allocation4], %s218_s17, %s218_s17, %s219_s18  }
  0xad   :  { %215 = dma.done.wait [#allocation4], 256  }
  0xae   :  { %216 = vsyncadd [#allocation4], 4294967040 }
  0xaf   :  { %114 = vsyncpa [#allocation3], 1 }
  0xb0   :  { %115 = vsyncpa [#allocation6], 1 }
  0xb1   :  { %116 = vsyncpa [#allocation4], 1 }

</bundles_post_ra>
